<compile_context>
chip_gen: v6e
topology: v6e:2x2x1
jax: 0.10.0
libtpu: 0.0.40
codegen_flags: <defaults>
</compile_context>

<pallas_src>
import math
import jax
import jax.numpy as jnp
import numpy as np
from jax.experimental import pallas as pl
from jax.experimental.pallas import tpu as pltpu

# Problem configuration (ratio=16 requires C >= 16 so the hidden dim is >= 1).
B, C, H, W = 2, 32, 16, 16
RATIO = 16
HIDDEN = C // RATIO          # 2
KSIZE = 7
PAD = 3                      # padding for the 7x7 spatial-attention conv


def cbam_kernel(x_ref, w1t_ref, w2_ref, wsa_ref, o_ref):
    # x_ref:   (C, HW)      VMEM  lane-dense input slab for this batch element
    # w1t_ref: (C, HIDDEN)  VMEM  ChannelAttention.fc1 weight, transposed
    # w2_ref:  (C, HIDDEN)  VMEM  ChannelAttention.fc2 weight
    # wsa_ref: (2, HW, HW)  VMEM  7x7 conv folded into per-channel Toeplitz mats
    # o_ref:   (C, HW)      VMEM  output slab
    x = x_ref[...]
    c, hw = x.shape                      # derived from the ref, not globals
    hidden = w1t_ref.shape[1]

    # ---------------- channel attention (VPU, fused avg/max MLP) ----------
    avg_c = jnp.mean(x, axis=1, keepdims=True)             # (C, 1)
    max_c = jnp.max(x, axis=1, keepdims=True)              # (C, 1)
    w1t = w1t_ref[...]                                     # (C, HIDDEN)
    w2 = w2_ref[...]                                       # (C, HIDDEN)

    # fc2(relu(fc1(avg))) + fc2(relu(fc1(max))) == fc2(relu_avg + relu_max)
    # evaluated as one unrolled pass over the (tiny) hidden dimension.
    y = jnp.zeros((c, 1), jnp.float32)
    for j in range(hidden):                                # hidden == 2
        w1j = w1t[:, j:j + 1]                              # (C, 1)
        h_avg = jnp.sum(w1j * avg_c, axis=0, keepdims=True)   # (1, 1)
        h_max = jnp.sum(w1j * max_c, axis=0, keepdims=True)   # (1, 1)
        h = jnp.maximum(h_avg, 0.0) + jnp.maximum(h_max, 0.0)
        y = y + w2[:, j:j + 1] * h                          # (C, 1)
    ca = jax.nn.sigmoid(y)                                  # (C, 1)
    out1 = x * ca                                           # (C, HW)

    # ---------------- spatial attention (conv as Toeplitz matmul) ---------
    avg_s = jnp.mean(out1, axis=0, keepdims=True)           # (1, HW)
    max_s = jnp.max(out1, axis=0, keepdims=True)            # (1, HW)
    logits = (jnp.dot(avg_s, wsa_ref[0], preferred_element_type=jnp.float32)
              + jnp.dot(max_s, wsa_ref[1], preferred_element_type=jnp.float32))
    sa = jax.nn.sigmoid(logits)                              # (1, HW)

    o_ref[...] = (out1 * sa).astype(o_ref.dtype)


def build_spatial_toeplitz(wconv, h, w, ksize, pad):
    """Fold the 2-channel ksize x ksize conv (zero padding) into (2, HW, HW).

    out_flat[q] = sum_p in_flat[p] * M[ch, p, q] reproduces PyTorch Conv2d
    cross-correlation with zero padding exactly.  Built once in the wrapper
    (pure weight preprocessing), so the kernel never pads/shifts.
    """
    hw = h * w
    ii, jj = jnp.meshgrid(jnp.arange(h), jnp.arange(w), indexing="ij")
    ii = ii.reshape(hw)
    jj = jj.reshape(hw)
    di = ii[:, None] - ii[None, :] + pad                    # (HW, HW) tap rows
    dj = jj[:, None] - jj[None, :] + pad                    # (HW, HW) tap cols
    valid = (di >= 0) & (di < ksize) & (dj >= 0) & (dj < ksize)
    di = jnp.clip(di, 0, ksize - 1)
    dj = jnp.clip(dj, 0, ksize - 1)
    taps = wconv[:, di, dj]                                 # (2, HW, HW)
    return jnp.where(valid[None], taps, 0.0).astype(jnp.float32)


def cbam_pallas(x, w1, w2, wconv):
    b, c, h, w = x.shape
    hw = h * w
    hidden = w1.shape[0]

    x_flat = x.reshape(b, c, hw)                            # lane-dense slabs
    w1t = jnp.asarray(w1, jnp.float32).T                    # (C, HIDDEN)
    w2m = jnp.asarray(w2, jnp.float32)                      # (C, HIDDEN)
    wsa = build_spatial_toeplitz(wconv, h, w, KSIZE, PAD)   # (2, HW, HW)

    out = pl.pallas_call(
        cbam_kernel,
        out_shape=jax.ShapeDtypeStruct((b, c, hw), x.dtype),
        grid=(b,),
        in_specs=[
            pl.BlockSpec((None, c, hw), lambda i: (i, 0, 0)),
            pl.BlockSpec((c, hidden), lambda i: (0, 0)),
            pl.BlockSpec((c, hidden), lambda i: (0, 0)),
            pl.BlockSpec((2, hw, hw), lambda i: (0, 0, 0)),
        ],
        out_specs=pl.BlockSpec((None, c, hw), lambda i: (i, 0, 0)),
        compiler_params=pltpu.CompilerParams(
            dimension_semantics=("parallel",)),   # v7x: one batch elem per TC
    )(x_flat, w1t, w2m, wsa)
    return out.reshape(b, c, h, w)


def cbam_reference(x, w1, w2, wconv):
    # Pure-JAX reference matching the PyTorch forward semantics.
    avg = jnp.mean(x, axis=(2, 3))                           # (B, C)
    mx = jnp.max(x, axis=(2, 3))                             # (B, C)

    def mlp(v):
        h = jnp.maximum(v @ w1.T, 0.0)                       # (B, HIDDEN)
        return h @ w2.T                                      # (B, C)

    ca = jax.nn.sigmoid(mlp(avg) + mlp(mx))                  # (B, C)
    out1 = x * ca[:, :, None, None]

    avg_s = jnp.mean(out1, axis=1, keepdims=True)            # (B,1,H,W)
    max_s = jnp.max(out1, axis=1, keepdims=True)             # (B,1,H,W)
    cat = jnp.concatenate([avg_s, max_s], axis=1)            # (B,2,H,W)
    conv = jax.lax.conv_general_dilated(
        cat, wconv[None, ...], window_strides=(1, 1),
        padding=((PAD, PAD), (PAD, PAD)),
        dimension_numbers=("NCHW", "OIHW", "NCHW"))          # (B,1,H,W)
    sa = jax.nn.sigmoid(conv)
    return out1 * sa


if __name__ == "__main__":
    key = jax.random.PRNGKey(0)
    kx, k1, k2, k3 = jax.random.split(key, 4)

    # Deterministic parameter init (matches PyTorch Conv2d uniform bounds).
    b1 = 1.0 / math.sqrt(C)
    b2 = 1.0 / math.sqrt(HIDDEN)
    b3 = 1.0 / math.sqrt(2 * KSIZE * KSIZE)
    w1 = jax.random.uniform(k1, (HIDDEN, C), jnp.float32, -b1, b1)     # fc1
    w2 = jax.random.uniform(k2, (C, HIDDEN), jnp.float32, -b2, b2)     # fc2
    wconv = jax.random.uniform(k3, (2, KSIZE, KSIZE), jnp.float32, -b3, b3)

    x = jax.random.normal(kx, (B, C, H, W), jnp.float32)

    out = cbam_pallas(x, w1, w2, wconv)
    out = jax.block_until_ready(out)

    ref = jax.block_until_ready(cbam_reference(x, w1, w2, wconv))
    assert out.shape == (B, C, H, W)
    # Slightly relaxed tolerance: the in-kernel f32 matmuls and the XLA conv in
    # the reference may use different multi-pass MXU decompositions.
    np.testing.assert_allclose(np.asarray(out), np.asarray(ref),
                               rtol=2e-3, atol=1e-3)
    print("KERNEL_OK")
</pallas_src>

<mosaic_0001>
module attributes {stable_mosaic.version = 11 : i64} {
  func.func @cbam_kernel(%arg0: i32, %arg1: memref<1x32x256xf32, #tpu.memory_space<vmem>>, %arg2: memref<32x2xf32, #tpu.memory_space<vmem>>, %arg3: memref<32x2xf32, #tpu.memory_space<vmem>>, %arg4: memref<2x256x256xf32, #tpu.memory_space<vmem>>, %arg5: memref<1x32x256xf32, #tpu.memory_space<vmem>>) attributes {dimension_semantics = [#tpu.dimension_semantics<parallel>], iteration_bounds = array<i64: 2>, scalar_prefetch = 0 : i64, scratch_operands = 0 : i64, tpu.core_type = #tpu.core_type<tc>, window_params = [{transform_indices = @transform_0, window_bounds = array<i64: 1, 32, 256>}, {pipeline_mode = #tpu.pipeline_mode<synchronous>, transform_indices = @transform_1, window_bounds = array<i64: 32, 2>}, {pipeline_mode = #tpu.pipeline_mode<synchronous>, transform_indices = @transform_2, window_bounds = array<i64: 32, 2>}, {pipeline_mode = #tpu.pipeline_mode<synchronous>, transform_indices = @transform_3, window_bounds = array<i64: 2, 256, 256>}, {transform_indices = @transform_4, window_bounds = array<i64: 1, 32, 256>}]} {
    %c0 = arith.constant 0 : index
    %c0_0 = arith.constant 0 : index
    %c0_1 = arith.constant 0 : index
    %0 = vector.load %arg1[%c0, %c0_0, %c0_1] : memref<1x32x256xf32, #tpu.memory_space<vmem>>, vector<1x32x256xf32>
    %1 = vector.shape_cast %0 : vector<1x32x256xf32> to vector<32x256xf32>
    %cst = arith.constant dense<0.000000e+00> : vector<32xf32>
    %2 = vector.multi_reduction <add>, %1, %cst [1] : vector<32x256xf32> to vector<32xf32>
    %3 = vector.shape_cast %2 : vector<32xf32> to vector<32x1xf32>
    %cst_2 = arith.constant 2.560000e+02 : f32
    %4 = vector.broadcast %cst_2 : f32 to vector<32x1xf32>
    %5 = arith.divf %3, %4 : vector<32x1xf32>
    %cst_3 = arith.constant dense<0xFF800000> : vector<32xf32>
    %6 = vector.multi_reduction <maximumf>, %1, %cst_3 [1] : vector<32x256xf32> to vector<32xf32>
    %7 = vector.shape_cast %6 : vector<32xf32> to vector<32x1xf32>
    %c0_4 = arith.constant 0 : index
    %c0_5 = arith.constant 0 : index
    %8 = vector.load %arg2[%c0_4, %c0_5] : memref<32x2xf32, #tpu.memory_space<vmem>>, vector<32x2xf32>
    %c0_6 = arith.constant 0 : index
    %c0_7 = arith.constant 0 : index
    %9 = vector.load %arg3[%c0_6, %c0_7] : memref<32x2xf32, #tpu.memory_space<vmem>>, vector<32x2xf32>
    %cst_8 = arith.constant 0.000000e+00 : f32
    %10 = vector.broadcast %cst_8 : f32 to vector<32x1xf32>
    %11 = vector.extract_strided_slice %8 {offsets = [0, 0], sizes = [32, 1], strides = [1, 1]} : vector<32x2xf32> to vector<32x1xf32>
    %12 = arith.mulf %11, %5 : vector<32x1xf32>
    %cst_9 = arith.constant dense<0.000000e+00> : vector<1xf32>
    %13 = vector.multi_reduction <add>, %12, %cst_9 [0] : vector<32x1xf32> to vector<1xf32>
    %14 = vector.shape_cast %13 : vector<1xf32> to vector<1x1xf32>
    %15 = arith.mulf %11, %7 : vector<32x1xf32>
    %cst_10 = arith.constant dense<0.000000e+00> : vector<1xf32>
    %16 = vector.multi_reduction <add>, %15, %cst_10 [0] : vector<32x1xf32> to vector<1xf32>
    %17 = vector.shape_cast %16 : vector<1xf32> to vector<1x1xf32>
    %cst_11 = arith.constant 0.000000e+00 : f32
    %18 = vector.broadcast %cst_11 : f32 to vector<1x1xf32>
    %19 = arith.maximumf %14, %18 : vector<1x1xf32>
    %cst_12 = arith.constant 0.000000e+00 : f32
    %20 = vector.broadcast %cst_12 : f32 to vector<1x1xf32>
    %21 = arith.maximumf %17, %20 : vector<1x1xf32>
    %22 = arith.addf %19, %21 : vector<1x1xf32>
    %23 = vector.extract_strided_slice %9 {offsets = [0, 0], sizes = [32, 1], strides = [1, 1]} : vector<32x2xf32> to vector<32x1xf32>
    %24 = vector.broadcast %22 : vector<1x1xf32> to vector<32x1xf32>
    %25 = arith.mulf %23, %24 : vector<32x1xf32>
    %26 = arith.addf %10, %25 : vector<32x1xf32>
    %27 = vector.extract_strided_slice %8 {offsets = [0, 1], sizes = [32, 1], strides = [1, 1]} : vector<32x2xf32> to vector<32x1xf32>
    %28 = arith.mulf %27, %5 : vector<32x1xf32>
    %cst_13 = arith.constant dense<0.000000e+00> : vector<1xf32>
    %29 = vector.multi_reduction <add>, %28, %cst_13 [0] : vector<32x1xf32> to vector<1xf32>
    %30 = vector.shape_cast %29 : vector<1xf32> to vector<1x1xf32>
    %31 = arith.mulf %27, %7 : vector<32x1xf32>
    %cst_14 = arith.constant dense<0.000000e+00> : vector<1xf32>
    %32 = vector.multi_reduction <add>, %31, %cst_14 [0] : vector<32x1xf32> to vector<1xf32>
    %33 = vector.shape_cast %32 : vector<1xf32> to vector<1x1xf32>
    %cst_15 = arith.constant 0.000000e+00 : f32
    %34 = vector.broadcast %cst_15 : f32 to vector<1x1xf32>
    %35 = arith.maximumf %30, %34 : vector<1x1xf32>
    %cst_16 = arith.constant 0.000000e+00 : f32
    %36 = vector.broadcast %cst_16 : f32 to vector<1x1xf32>
    %37 = arith.maximumf %33, %36 : vector<1x1xf32>
    %38 = arith.addf %35, %37 : vector<1x1xf32>
    %39 = vector.extract_strided_slice %9 {offsets = [0, 1], sizes = [32, 1], strides = [1, 1]} : vector<32x2xf32> to vector<32x1xf32>
    %40 = vector.broadcast %38 : vector<1x1xf32> to vector<32x1xf32>
    %41 = arith.mulf %39, %40 : vector<32x1xf32>
    %42 = arith.addf %26, %41 : vector<32x1xf32>
    %43 = arith.negf %42 : vector<32x1xf32>
    %44 = math.exp %43 : vector<32x1xf32>
    %cst_17 = arith.constant 1.000000e+00 : f32
    %45 = vector.broadcast %cst_17 : f32 to vector<32x1xf32>
    %46 = arith.addf %45, %44 : vector<32x1xf32>
    %47 = arith.divf %45, %46 : vector<32x1xf32>
    %48 = vector.broadcast %47 : vector<32x1xf32> to vector<32x256xf32>
    %49 = arith.mulf %1, %48 : vector<32x256xf32>
    %cst_18 = arith.constant dense<0.000000e+00> : vector<256xf32>
    %50 = vector.multi_reduction <add>, %49, %cst_18 [0] : vector<32x256xf32> to vector<256xf32>
    %51 = vector.shape_cast %50 : vector<256xf32> to vector<1x256xf32>
    %cst_19 = arith.constant 3.200000e+01 : f32
    %52 = vector.broadcast %cst_19 : f32 to vector<1x256xf32>
    %53 = arith.divf %51, %52 : vector<1x256xf32>
    %cst_20 = arith.constant dense<0xFF800000> : vector<256xf32>
    %54 = vector.multi_reduction <maximumf>, %49, %cst_20 [0] : vector<32x256xf32> to vector<256xf32>
    %55 = vector.shape_cast %54 : vector<256xf32> to vector<1x256xf32>
    %c0_21 = arith.constant 0 : index
    %c0_22 = arith.constant 0 : index
    %c0_23 = arith.constant 0 : index
    %56 = vector.load %arg4[%c0_21, %c0_22, %c0_23] : memref<2x256x256xf32, #tpu.memory_space<vmem>>, vector<1x256x256xf32>
    %57 = vector.shape_cast %56 : vector<1x256x256xf32> to vector<256x256xf32>
    %cst_24 = arith.constant dense<0.000000e+00> : vector<1x256xf32>
    %58 = tpu.matmul %53, %57, %cst_24 {dimension_numbers = #tpu.dot_dimension_numbers<[1], [0], [0], [1], [0, 0, 1, 1], [], []>} : vector<1x256xf32>, vector<256x256xf32>, vector<1x256xf32> -> vector<1x256xf32>
    %c1 = arith.constant 1 : index
    %c0_25 = arith.constant 0 : index
    %c0_26 = arith.constant 0 : index
    %59 = vector.load %arg4[%c1, %c0_25, %c0_26] : memref<2x256x256xf32, #tpu.memory_space<vmem>>, vector<1x256x256xf32>
    %60 = vector.shape_cast %59 : vector<1x256x256xf32> to vector<256x256xf32>
    %cst_27 = arith.constant dense<0.000000e+00> : vector<1x256xf32>
    %61 = tpu.matmul %55, %60, %cst_27 {dimension_numbers = #tpu.dot_dimension_numbers<[1], [0], [0], [1], [0, 0, 1, 1], [], []>} : vector<1x256xf32>, vector<256x256xf32>, vector<1x256xf32> -> vector<1x256xf32>
    %62 = arith.addf %58, %61 : vector<1x256xf32>
    %63 = arith.negf %62 : vector<1x256xf32>
    %64 = math.exp %63 : vector<1x256xf32>
    %cst_28 = arith.constant 1.000000e+00 : f32
    %65 = vector.broadcast %cst_28 : f32 to vector<1x256xf32>
    %66 = arith.addf %65, %64 : vector<1x256xf32>
    %67 = arith.divf %65, %66 : vector<1x256xf32>
    %68 = vector.broadcast %67 : vector<1x256xf32> to vector<32x256xf32>
    %69 = arith.mulf %49, %68 : vector<32x256xf32>
    %c0_29 = arith.constant 0 : index
    %c0_30 = arith.constant 0 : index
    %c0_31 = arith.constant 0 : index
    %70 = vector.load %arg5[%c0_29, %c0_30, %c0_31] : memref<1x32x256xf32, #tpu.memory_space<vmem>>, vector<1x32x256xf32>
    %71 = vector.shape_cast %70 : vector<1x32x256xf32> to vector<32x256xf32>
    %72 = vector.shape_cast %69 : vector<32x256xf32> to vector<1x32x256xf32>
    tpu.vector_store %arg5[%c0_29, %c0_30, %c0_31], %72 {strides = array<i32>} : memref<1x32x256xf32, #tpu.memory_space<vmem>>, vector<1x32x256xf32>,
    return
  }
  func.func @transform_0(%arg0: i32) -> (i32, i32, i32) {
    %c0_i32 = arith.constant 0 : i32
    %c0_i32_0 = arith.constant 0 : i32
    %c0_i32_1 = arith.constant 0 : i32
    return %arg0, %c0_i32, %c0_i32_0 : i32, i32, i32
  }
  func.func @transform_1(%arg0: i32) -> (i32, i32) {
    %c0_i32 = arith.constant 0 : i32
    %c0_i32_0 = arith.constant 0 : i32
    %c0_i32_1 = arith.constant 0 : i32
    return %c0_i32, %c0_i32_0 : i32, i32
  }
  func.func @transform_2(%arg0: i32) -> (i32, i32) {
    %c0_i32 = arith.constant 0 : i32
    %c0_i32_0 = arith.constant 0 : i32
    %c0_i32_1 = arith.constant 0 : i32
    return %c0_i32, %c0_i32_0 : i32, i32
  }
  func.func @transform_3(%arg0: i32) -> (i32, i32, i32) {
    %c0_i32 = arith.constant 0 : i32
    %c0_i32_0 = arith.constant 0 : i32
    %c0_i32_1 = arith.constant 0 : i32
    %c0_i32_2 = arith.constant 0 : i32
    return %c0_i32, %c0_i32_0, %c0_i32_1 : i32, i32, i32
  }
  func.func @transform_4(%arg0: i32) -> (i32, i32, i32) {
    %c0_i32 = arith.constant 0 : i32
    %c0_i32_0 = arith.constant 0 : i32
    %c0_i32_1 = arith.constant 0 : i32
    return %arg0, %c0_i32, %c0_i32_0 : i32, i32, i32
  }
}

</mosaic_0001>

<bundles_post_ra>
// kernel: tpu_custom_call.1
= control target key start
LH: loop header
LB: loop body
LE: loop exit
PB: predicated region body
PF: predicated region fallthrough
CT: control target
= control target key end

     0   :  { %9 = vsyncpa [#allocation3], 0  ;;  %s1461_s0 = inlined_call_operand.hbm [shape: f32[2,32,256], index: 0, kind: input, shape index: {}]   ;;  %s1462_s1 = inlined_call_operand.vmem [shape: f32[32,2], index: 1, kind: input, shape index: {}]   ;;  %s1463_s2 = inlined_call_operand.vmem [shape: f32[32,2], index: 2, kind: input, shape index: {}]   ;;  %s1464_s3 = inlined_call_operand.hbm [shape: f32[2,256,256], index: 3, kind: input, shape index: {}]   ;;  %s1465_s4 = inlined_call_operand.hbm [shape: f32[2,32,256], index: 4, kind: output, shape index: {}]  }
   0x1   :  { %11 = vsyncpa [#allocation3 + $0x1], 0 }
   0x2   :  { %12 = vsyncpa [#allocation6], 0 }
   0x3   :  { %13 = vsyncpa [#allocation4], 0 }
   0x4   :  { %15 = vsyncpa [#allocation4 + $0x1], 0  ;;  %s1142_s15 = smov 0   ;;  %s1144_s16 = smov 0  }
   0x5   :  { %s1146_s17 = smov 0   ;;  %s1148_s18 = smov 0  }
   0x6 LB: > { %s1163_s19 = sadd.s32 4294967295, %s1106_s18   ;;  %s871_s20 = sadd.s32 4294967294, %s1106_s18   ;;  %s1106_s18 = sphi %s1148_s18, %s1487_s18   ;;  %s1102_s17 = sphi %s1146_s17, %s1486_s17   ;;  %s1098_s16 = sphi %s1144_s16, %s1485_s16   ;;  %s1094_s15 = sphi %s1142_s15, %s1484_s15  }
   0x7   : > { %p41_p0 = scmp.ne.s32.totalorder %s1098_s16, %s1094_s15  ;;  %p1466_p1 = scmp.eq.s32.totalorder %s1163_s19, 0 }
   0x8   : > { %p134_p3 = scmp.eq.s32.totalorder %s871_s20, 1  ;;  %p872_p5 = scmp.ge.s32.totalorder %s1106_s18, 1 }
   0x9   : > { %p1172_p4 = por %p1466_p1, %p41_p0  ;;  %p141_p7 = scmp.lt.s32.totalorder %s1106_s18, 3 }
   0xa   : > { %p1177_p6 = por %p134_p3, %p41_p0  ;;  %s1108_s24 = smov [#allocation5]  }
   0xb   : > { %s1470_s21 = scalar_select %p1172_p4, 1, 0 }
   0xc   : > { %s1471_s22 = scalar_select %p1177_p6, 1, 0 }
   0xd   : > { %p1182_p8 = pnand %p872_p5, %p141_p7  ;;  %s159_s25 = sshll.u32 %s1108_s24, 4  ;;  %s160_s25 = int_to_ptr.vmem [resolvable:$true] %s159_s25 }
   0xe   : > { %s1196_s27 = sadd.s32 1, %s1106_s18   ;;  %s28_s28 = sadd.s32 1, %s1102_s17 }
   0xf   : > { %s1472_s23 = scalar_select %p1182_p8, 1, 0 }
  0x10   : > { %p903_p9 = pneg %p1182_p8  ;;  %s25_s29 = ssub.s32 %s1106_s18, %s1196_s27 }
  0x11   : > { %s995_s30 = scalar_lea.vmem %s160_s25, 16384  ;;  %p1003_p5 = scmp.lt.s32.totalorder %s160_s25, %s160_s25 }
  0x12   : > { %p1191_p11 = pnand %p903_p9, %p1466_p1  ;;  %p996_p13 = scmp.ne.s32.totalorder %s160_s25, %s995_s30 }
  0x13   : > { %p1004_p7 = scmp.lt.s32.totalorder %s995_s30, %s995_s30 }
  0x14   : > { %p986_p12 = pneg %p1191_p11 }
  0x15   : > { %p1005_p10 = por %p1004_p7, %p1003_p5 }
  0x16   : > { %p998_p0 = pnand %p996_p13, %p986_p12 }
  0x18   : > { %p999_p3 = pneg %p998_p0 }
  0x1a   : > { %p1006_p2 = pnand %p1005_p10, %p999_p3 }
  0x1c   : > { %1009 = shalt.err (!%p1006_p2)
}
  0x1d   : > { %s1109_s5 = smov 256   ;;  %s1110_s6 = smov 16  }
  0x1e   : > { %906 = dma.hbm_to_vmem [thread:$0]  (!%p1191_p11), %s1464_s3, 16384, %s160_s25, [#allocation6], %s1109_s5, %s1109_s5, %s1110_s6  }
  0x1f   : > { %p26_p2 = scmp.eq.s32.totalorder %s25_s29, 0  ;;  %p35_p9 = scmp.ne.s32.totalorder %s1102_s17, %s1098_s16 }
  0x20   : > { %p36_p10 = scmp.eq.s32.totalorder %s1106_s18, 0  ;;  %p916_p12 = scmp.lt.s32.totalorder %s1106_s18, 2 }
  0x21   : > { %s1216_s9 = scalar_select %p26_p2, %s1102_s17, %s28_s28  }
  0x22   : > { %p37_p13 = por %p36_p10, %p35_p9  ;;  %p1474_p0 = scmp.eq.s32.totalorder %s1163_s19, 1 }
  0x23   : > { %s173_s11 = sand.u32 1, %s1102_s17   ;;  %s893_s12 = sshll.u32 %s1106_s18, 10 }
  0x24   : > { %p1220_p3 = por %p1474_p0, %p35_p9  ;;  %s875_s13 = sshll.u32 %s173_s11, 6 }
  0x25   : > { %s1229_s24 = scalar_lea.hbm %s1461_s0, %s893_s12  ;;  %s177_s25 = scalar_lea.vmem [#allocation2], %s875_s13 }
  0x26   : > { %s1475_s10 = scalar_select %p1220_p3, 1, 0 }
  0x27   : > { %s184_s26 = sshll.u32 %s177_s25, 4  ;;  %p1231_p11 = pnand %p916_p12, %p37_p13  ;;  %s1235_s26 = int_to_ptr.vmem [resolvable:$true] %s184_s26 }
  0x28   : > { %s1237_s29 = scalar_lea.sflag [#allocation3], %s173_s11  ;;  %s1010_s30 = scalar_lea.hbm %s1229_s24, 1024 }
  0x29   : > { %p1011_p5 = scmp.ne.s32.totalorder %s1229_s24, %s1010_s30  ;;  %p1012_p7 = pneg %p1231_p11 }
  0x2a   : > { %s1015_s12 = scalar_lea.hbm %s1461_s0, 2048  ;;  %p1016_p10 = scmp.lt.s32.totalorder %s1229_s24, %s1461_s0 }
  0x2b   : > { %p1013_p2 = pnand %p1012_p7, %p1011_p5  ;;  %p1017_p12 = scmp.lt.s32.totalorder %s1015_s12, %s1010_s30 }
  0x2d   : > { %p1014_p9 = pneg %p1013_p2  ;;  %p1018_p13 = por %p1017_p12, %p1016_p10 }
  0x2f   : > { %p1019_p0 = pnand %p1018_p13, %p1014_p9 }
  0x31   : > { %1022 = shalt.err (!%p1019_p0)
}
  0x32   : > { %s1023_s11 = scalar_lea.vmem %s1235_s26, 1024  ;;  %s1111_s20 = smov [#allocation2]  }
  0x33   : > { %p1024_p1 = scmp.ne.s32.totalorder %s1235_s26, %s1023_s11  ;;  %s1028_s25 = sshll.u32 %s1111_s20, 4  ;;  %s1029_s25 = int_to_ptr.vmem [resolvable:$false] %s1028_s25 }
  0x34   : > { %s1030_s7 = scalar_lea.vmem %s1029_s25, 2048  ;;  %p1031_p2 = scmp.lt.s32.totalorder %s1235_s26, %s1029_s25 }
  0x35   : > { %p1026_p6 = pnand %p1024_p1, %p1012_p7  ;;  %p1032_p3 = scmp.lt.s32.totalorder %s1030_s7, %s1023_s11 }
  0x37   : > { %p1027_p5 = pneg %p1026_p6  ;;  %p1033_p4 = por %p1032_p3, %p1031_p2 }
  0x39   : > { %p1034_p8 = pnand %p1033_p4, %p1027_p5 }
  0x3b   : > { %1037 = shalt.err (!%p1034_p8)
}
  0x3c   : > { %910 = dma.hbm_to_vmem [thread:$0]  (!%p1231_p11), %s1229_s24, 1024, %s1235_s26, %s1237_s29, %s1109_s5, %s1109_s5, %s1110_s6  }
  0x3d   : > { %p1477_p1 = scmp.ne.s32.totalorder %s1472_s23, 0 }
  0x3e   : > { %s1264_s30 = sand.u32 (!%p1477_p1), 1, %s1098_s16   ;;  %p1478_p4 = scmp.ne.s32.totalorder (!%p1477_p1), %s1470_s21, 0 }
  0x3f   : > { %196 = sbr.rel (%p1477_p1) target bundleno = 800 (0x320), region = 36  ;;  %s879_s8 = sshll.u32 (!%p1477_p1), %s1264_s30, 6 }
  0x40   : > { %s199_s12 = scalar_lea.sflag (!%p1477_p1), [#allocation3], %s1264_s30  ;;  %s202_s28 = scalar_lea.vmem (!%p1477_p1), [#allocation2], %s879_s8 }
  0x44   : > { %1081 = dma.done.wait (%p1478_p4), %s199_s12, 1024  }
  0x45   : > { %1083 = vsyncadd (%p1478_p4), %s199_s12, 4294966272  ;;  %p1479_p6 = scmp.eq.s32.totalorder %s1163_s19, 0 }
  0x47   : > { %1085 = dma.done.wait (%p1479_p6), [#allocation6], 16384   ;;  %p1480_p8 = pmov %p1479_p6 }
  0x48   : > { %v1278_v0 = vld [vmem:[%s202_s28 + $0x20] sm:$0xff]  ;;  %v1280_v1 = vld [vmem:[%s202_s28 + $0x28] sm:$0xff]  ;;  %v1288_v5 = vld [vmem:[%s202_s28 + $0x10] sm:$0xff]  ;;  %vm280_vm0 = vcmask 7168   ;;  %vm322_vm1 = vcmask 15368   ;;  %s1112_s23 = smov 127  }
  0x49   : > { %1087 = vsyncadd (%p1480_p8), [#allocation6], 4294950912  ;;  %v1282_v2 = vld [vmem:[%s202_s28] sm:$0xff]  ;;  %v245_v3 = vadd.f32 %v1280_v1, %v1278_v0  ;;  %v1286_v4 = vld [vmem:[%s202_s28 + $0x8] sm:$0xff]  ;;  %v262_v15 = vmax.f32 %v1278_v0, %v1280_v1  ;;  %s894_s5 = sshll.u32 %s1163_s19, 10  ;;  %s230_s6 = scalar_lea.vmem [#allocation7], %s879_s8 }
  0x4a   : > { %v1290_v6 = vld [vmem:[%s202_s28 + $0x18] sm:$0xff]  ;;  %v239_v7 = vadd.f32 %v1286_v4, %v1282_v2  ;;  %v256_v8 = vmax.f32 %v1282_v2, %v1286_v4  ;;  %v1298_v10 = vld [vmem:[%s202_s28 + $0x30] sm:$0xff]  ;;  %v268_v19 = vld [vmem:[%s1462_s1] sm:$0xff]  ;;  %s788_s24 = sshll.u32 %s230_s6, 4  ;;  %s1412_s8 = scalar_lea.hbm %s1465_s4, %s894_s5  ;;  %s1414_s24 = int_to_ptr.vmem [resolvable:$true] %s788_s24 }
  0x4b   : > { %246 = vadd.xlane.f32.xlu1 %v245_v3  ;;  %v242_v9 = vadd.f32 %v1290_v6, %v1288_v5  ;;  %v1300_v11 = vld [vmem:[%s202_s28 + $0x38] sm:$0xff]  ;;  %v259_v13 = vmax.f32 %v1288_v5, %v1290_v6  ;;  %v270_v22 = vld [vmem:[%s1462_s1 + $0x10] sm:$0xff]  ;;  %v269_v25 = vld [vmem:[%s1462_s1 + $0x8] sm:$0xff]  ;;  %s775_s29 = scalar_lea.sflag [#allocation4], %s1264_s30  ;;  %s1038_s13 = scalar_lea.vmem %s1414_s24, 1024 }
  0x4c   : > { %240 = vadd.xlane.f32.xlu0 %v239_v7  ;;  %v248_v12 = vadd.f32 %v1300_v11, %v1298_v10  ;;  %v265_v14 = vmax.f32 %v1298_v10, %v1300_v11  ;;  %v271_v31 = vld [vmem:[%s1462_s1 + $0x18] sm:$0xff]  ;;  %p1039_p3 = scmp.ne.s32.totalorder %s1414_s24, %s1038_s13  ;;  %p1481_p11 = scmp.ne.s32.totalorder %s1475_s10, 0 }
  0x4d   : > { %s1114_s14 = smov [#allocation7]  }
  0x4e   : > { %p1040_p7 = pnand %p1039_p3, %p1481_p11  ;;  %s1042_s11 = sshll.u32 %s1114_s14, 4  ;;  %s1043_s11 = int_to_ptr.vmem [resolvable:$false] %s1042_s11 }
  0x4f   : > { %257 = vmax.xlane.f32.xlu1 %v256_v8  ;;  %s1044_s20 = scalar_lea.vmem %s1043_s11, 2048  ;;  %p1045_p10 = scmp.lt.s32.totalorder %s1414_s24, %s1043_s11 }
  0x50   : > { %243 = vadd.xlane.f32.xlu0 %v242_v9  ;;  %p1041_p9 = pneg %p1040_p7  ;;  %p1046_p12 = scmp.lt.s32.totalorder %s1044_s20, %s1038_s13 }
  0x52   : > { %p1047_p13 = por %p1046_p12, %p1045_p10 }
  0x53   : > { %249 = vadd.xlane.f32.xlu1 %v248_v12 }
  0x54   : > { %260 = vmax.xlane.f32.xlu0 %v259_v13  ;;  %p1048_p0 = pnand %p1047_p13, %p1041_p9 }
  0x57   : > { %266 = vmax.xlane.f32.xlu1 %v265_v14 }
  0x58   : > { %263 = vmax.xlane.f32.xlu0 %v262_v15 }
  0xd4   : > { %v247_v16 = vpop.xlane.xlu1 %246 }
  0xd5   : > { %v241_v17 = vpop.xlane.xlu0 %240  ;;  %v254_v20 = vmul.f32 0.00390625, %v247_v16 }
  0xd6   : > { %v252_v18 = vmul.f32 0.00390625, %v241_v17 }
  0xd7   : > { %v278_v27 = vmul.f32 %v270_v22, %v254_v20 }
  0xd8   : > { %v258_v21 = vpop.xlane.xlu1 %257  ;;  %v276_v23 = vmul.f32 %v268_v19, %v252_v18 }
  0xd9   : > { %v244_v24 = vpop.xlane.xlu0 %243  ;;  %v294_v28 = vmul.f32 %v268_v19, %v258_v21  ;;  %v284_v41 = vsel %vm280_vm0, %v278_v27, 0.0  ;;  %v326_v46 = vsel %vm322_vm1, %v278_v27, 0.0 }
  0xda   : > { %v253_v26 = vmul.f32 0.00390625, %v244_v24  ;;  %v281_v32 = vsel %vm280_vm0, %v276_v23, 0.0  ;;  %v323_v35 = vsel %vm322_vm1, %v276_v23, 0.0 }
  0xdb   : > { %v298_v43 = vsel %vm280_vm0, %v294_v28, 0.0  ;;  %v336_v48 = vsel %vm322_vm1, %v294_v28, 0.0 }
  0xdc   : > { %v250_v29 = vpop.xlane.xlu1 %249  ;;  %v277_v30 = vmul.f32 %v269_v25, %v253_v26 }
  0xdd   : > { %v255_v33 = vmul.f32 0.00390625, %v250_v29  ;;  %v261_v34 = vpop.xlane.xlu0 %260 }
  0xde   : > { %v282_v36 = vsel %vm280_vm0, %v277_v30, 0.0  ;;  %v324_v37 = vsel %vm322_vm1, %v277_v30, 0.0  ;;  %v295_v38 = vmul.f32 %v269_v25, %v261_v34 }
  0xdf   : > { %v283_v39 = vadd.f32 %v282_v36, %v281_v32  ;;  %v325_v40 = vadd.f32 %v324_v37, %v323_v35  ;;  %v279_v42 = vmul.f32 %v271_v31, %v255_v33 }
  0xe0   : > { %v299_v44 = vsel %vm280_vm0, %v295_v38, 0.0  ;;  %v337_v45 = vsel %vm322_vm1, %v295_v38, 0.0  ;;  %v267_v47 = vpop.xlane.xlu1 %266 }
  0xe1   : > { %v300_v49 = vadd.f32 %v299_v44, %v298_v43  ;;  %v285_v50 = vadd.f32 %v284_v41, %v283_v39  ;;  %v327_v51 = vadd.f32 %v326_v46, %v325_v40  ;;  %v264_v52 = vpop.xlane.xlu0 %263  ;;  %v286_v54 = vsel %vm280_vm0, %v279_v42, 0.0  ;;  %v273_v40 = vld [vmem:[%s1463_s2 + $0x8] sm:$0xff]  ;;  %v272_v41 = vld [vmem:[%s1463_s2] sm:$0xff]  ;;  %v274_v43 = vld [vmem:[%s1463_s2 + $0x10] sm:$0xff] }
  0xe2   : > { %v296_v53 = vmul.f32 %v270_v22, %v264_v52  ;;  %v328_v55 = vsel %vm322_vm1, %v279_v42, 0.0  ;;  %v297_v56 = vmul.f32 %v271_v31, %v267_v47  ;;  %v338_v57 = vadd.f32 %v337_v45, %v336_v48  ;;  %v275_v44 = vld [vmem:[%s1463_s2 + $0x18] sm:$0xff] }
  0xe3   : > { %v287_v58 = vadd.f32 %v286_v54, %v285_v50  ;;  %v329_v59 = vadd.f32 %v328_v55, %v327_v51  ;;  %v1113_v54 = vmov 0   ;;  %v563_v55 = vld [vmem:[#allocation5 + $0x2f8] sm:$0xff] }
  0xe4   : > { %v301_v60 = vsel %vm280_vm0, %v296_v53, 0.0  ;;  %v339_v61 = vsel %vm322_vm1, %v296_v53, 0.0  ;;  %v303_v62 = vsel %vm280_vm0, %v297_v56, 0.0  ;;  %v341_v63 = vsel %vm322_vm1, %v297_v56, 0.0  ;;  %959 = vset.pattern.permute.xlu1 %v1113_v54  ;;  %958 = vset.pattern.permute.xlu0 %v1113_v54  ;;  %v498_v56 = vld [vmem:[#allocation5 + $0xf8] sm:$0xff]  ;;  %v473_v54 = vld [vmem:[#allocation5 + $0x30] sm:$0xff] }
  0xe5   : > { %v302_v3 = vadd.f32 %v301_v60, %v300_v49  ;;  %v340_v7 = vadd.f32 %v339_v61, %v338_v57  ;;  %v288_v8 = vrot.slane %v287_v58, 4  ;;  %v330_v9 = vrot.slane %v329_v59, 4  ;;  %v562_v57 = vld [vmem:[#allocation5 + $0x2f0] sm:$0xff]  ;;  %596 = vmatprep.subr.mxu0 %v563_v55  ;;  %667 = vmatprep.subr.mxu1 %v498_v56  ;;  %v496_v60 = vld [vmem:[#allocation5 + $0xe8] sm:$0xff]  ;;  %v560_v61 = vld [vmem:[#allocation5 + $0x2e0] sm:$0xff] }
  0xe6   : > { %597 = vmatpush1.msra.mxu0 %v562_v57  ;;  %v537_v55 = vld [vmem:[#allocation5 + $0x228] sm:$0xff]  ;;  %v536_v57 = vld [vmem:[#allocation5 + $0x220] sm:$0xff] }
  0xe7   : > { %v289_v12 = vadd.f32 %v288_v8, %v287_v58  ;;  %v304_v13 = vadd.f32 %v303_v62, %v302_v3  ;;  %v331_v14 = vadd.f32 %v330_v9, %v329_v59  ;;  %v342_v15 = vadd.f32 %v341_v63, %v340_v7  ;;  %v497_v58 = vld [vmem:[#allocation5 + $0xf0] sm:$0xff]  ;;  %v561_v59 = vld [vmem:[#allocation5 + $0x2e8] sm:$0xff]  ;;  %v495_v62 = vld [vmem:[#allocation5 + $0xe0] sm:$0xff] }
  0xe8   : > { %668 = vmatpush1.msra.mxu1 %v497_v58  ;;  %v559_v63 = vld [vmem:[#allocation5 + $0x2d8] sm:$0xff]  ;;  %598 = vmatprep.subr.mxu0 %v561_v59  ;;  %v558_v7 = vld [vmem:[#allocation5 + $0x2d0] sm:$0xff]  ;;  %v557_v9 = vld [vmem:[#allocation5 + $0x2c8] sm:$0xff] }
  0xe9   : > { %v290_v16 = vrot.slane %v289_v12, 2  ;;  %v305_v17 = vrot.slane %v304_v13, 4  ;;  %v332_v18 = vrot.slane %v331_v14, 2  ;;  %v343_v19 = vrot.slane %v342_v15, 4  ;;  %669 = vmatprep.subr.mxu1 %v496_v60  ;;  %v494_v3 = vld [vmem:[#allocation5 + $0xd8] sm:$0xff]  ;;  %v493_v8 = vld [vmem:[#allocation5 + $0xd0] sm:$0xff]  ;;  %599 = vmatpush1.msra.mxu0 %v560_v61 }
  0xea   : > { %670 = vmatpush1.msra.mxu1 %v495_v62  ;;  %600 = vmatprep.subr.mxu0 %v559_v63  ;;  %v472_v56 = vld [vmem:[#allocation5 + $0x28] sm:$0xff]  ;;  %v471_v58 = vld [vmem:[#allocation5 + $0x20] sm:$0xff]  ;;  %v535_v59 = vld [vmem:[#allocation5 + $0x218] sm:$0xff] }
  0xeb   : > { %v291_v20 = vadd.f32 %v290_v16, %v289_v12  ;;  %v306_v21 = vadd.f32 %v305_v17, %v304_v13  ;;  %v333_v22 = vadd.f32 %v332_v18, %v331_v14  ;;  %v344_v23 = vadd.f32 %v343_v19, %v342_v15  ;;  %v492_v12 = vld [vmem:[#allocation5 + $0xc8] sm:$0xff]  ;;  %671 = vmatprep.subr.mxu1 %v494_v3  ;;  %v556_v13 = vld [vmem:[#allocation5 + $0x2c0] sm:$0xff]  ;;  %v555_v15 = vld [vmem:[#allocation5 + $0x2b8] sm:$0xff] }
  0xec   : > { %v491_v14 = vld [vmem:[#allocation5 + $0xc0] sm:$0xff]  ;;  %601 = vmatpush1.msra.mxu0 %v558_v7  ;;  %672 = vmatpush1.msra.mxu1 %v493_v8  ;;  %v490_v16 = vld [vmem:[#allocation5 + $0xb8] sm:$0xff]  ;;  %v554_v17 = vld [vmem:[#allocation5 + $0x2b0] sm:$0xff] }
  0xed   : > { %v292_v24 = vrot.slane %v291_v20, 1  ;;  %v307_v25 = vrot.slane %v306_v21, 2  ;;  %v334_v26 = vrot.slane %v333_v22, 1  ;;  %v345_v27 = vrot.slane %v344_v23, 2  ;;  %602 = vmatprep.subr.mxu0 %v557_v9  ;;  %673 = vmatprep.subr.mxu1 %v492_v12  ;;  %v489_v18 = vld [vmem:[#allocation5 + $0xb0] sm:$0xff]  ;;  %v553_v19 = vld [vmem:[#allocation5 + $0x2a8] sm:$0xff] }
  0xee   : > { %603 = vmatpush1.msra.mxu0 %v556_v13  ;;  %674 = vmatpush1.msra.mxu1 %v491_v14  ;;  %v470_v60 = vld [vmem:[#allocation5 + $0x18] sm:$0xff]  ;;  %v534_v61 = vld [vmem:[#allocation5 + $0x210] sm:$0xff]  ;;  %v533_v63 = vld [vmem:[#allocation5 + $0x208] sm:$0xff] }
  0xef   : > { %v308_v28 = vadd.f32 %v307_v25, %v306_v21  ;;  %v346_v29 = vadd.f32 %v345_v27, %v344_v23  ;;  %v293_v30 = vadd.f32 %v292_v24, %v291_v20  ;;  %v335_v32 = vadd.f32 %v334_v26, %v333_v22  ;;  %v488_v20 = vld [vmem:[#allocation5 + $0xa8] sm:$0xff]  ;;  %604 = vmatprep.subr.mxu0 %v555_v15  ;;  %v552_v21 = vld [vmem:[#allocation5 + $0x2a0] sm:$0xff]  ;;  %v551_v23 = vld [vmem:[#allocation5 + $0x298] sm:$0xff] }
  0xf0   : > { %675 = vmatprep.subr.mxu1 %v490_v16  ;;  %v487_v22 = vld [vmem:[#allocation5 + $0xa0] sm:$0xff]  ;;  %605 = vmatpush1.msra.mxu0 %v554_v17  ;;  %v486_v24 = vld [vmem:[#allocation5 + $0x98] sm:$0xff]  ;;  %v550_v25 = vld [vmem:[#allocation5 + $0x290] sm:$0xff] }
  0xf1   : > { %v309_v31 = vrot.slane %v308_v28, 1  ;;  %v347_v33 = vrot.slane %v346_v29, 1  ;;  %v311_v36 = vmax.f32 %v293_v30, 0.0  ;;  %v349_v38 = vmax.f32 %v335_v32, 0.0  ;;  %676 = vmatpush1.msra.mxu1 %v489_v18  ;;  %606 = vmatprep.subr.mxu0 %v553_v19  ;;  %v485_v26 = vld [vmem:[#allocation5 + $0x90] sm:$0xff]  ;;  %v549_v27 = vld [vmem:[#allocation5 + $0x288] sm:$0xff] }
  0xf2   : > { %677 = vmatprep.subr.mxu1 %v488_v20  ;;  %607 = vmatpush1.msra.mxu0 %v552_v21  ;;  %v483_v30 = vld [vmem:[#allocation5 + $0x80] sm:$0xff]  ;;  %v482_v32 = vld [vmem:[#allocation5 + $0x78] sm:$0xff]  ;;  %v469_v62 = vld [vmem:[#allocation5 + $0x10] sm:$0xff] }
  0xf3   : > { %v310_v34 = vadd.f32 %v309_v31, %v308_v28  ;;  %v348_v35 = vadd.f32 %v347_v33, %v346_v29  ;;  %678 = vmatpush1.msra.mxu1 %v487_v22  ;;  %v484_v28 = vld [vmem:[#allocation5 + $0x88] sm:$0xff]  ;;  %608 = vmatprep.subr.mxu0 %v551_v23  ;;  %v548_v29 = vld [vmem:[#allocation5 + $0x280] sm:$0xff]  ;;  %v547_v31 = vld [vmem:[#allocation5 + $0x278] sm:$0xff] }
  0xf4   : > { %679 = vmatprep.subr.mxu1 %v486_v24  ;;  %609 = vmatpush1.msra.mxu0 %v550_v25  ;;  %v546_v33 = vld [vmem:[#allocation5 + $0x270] sm:$0xff]  ;;  %v468_v3 = vld [vmem:[#allocation5 + $0x8] sm:$0xff]  ;;  %v532_v7 = vld [vmem:[#allocation5 + $0x200] sm:$0xff] }
  0xf5   : > { %v312_v37 = vmax.f32 %v310_v34, 0.0  ;;  %v350_v39 = vmax.f32 %v348_v35, 0.0  ;;  %680 = vmatpush1.msra.mxu1 %v485_v26  ;;  %610 = vmatprep.subr.mxu0 %v549_v27  ;;  %v481_v34 = vld [vmem:[#allocation5 + $0x70] sm:$0xff]  ;;  %v545_v35 = vld [vmem:[#allocation5 + $0x268] sm:$0xff]  ;;  %v467_v8 = vld [vmem:[#allocation5] sm:$0xff] }
  0xf6   : > { %681 = vmatprep.subr.mxu1 %v484_v28  ;;  %611 = vmatpush1.msra.mxu0 %v548_v29  ;;  %v595_v9 = vld [vmem:[#allocation5 + $0x3f8] sm:$0xff]  ;;  %v594_v13 = vld [vmem:[#allocation5 + $0x3f0] sm:$0xff]  ;;  %v593_v15 = vld [vmem:[#allocation5 + $0x3e8] sm:$0xff] }
  0xf7   : > { %v351_v42 = vadd.f32 %v350_v39, %v349_v38  ;;  %v313_v45 = vadd.f32 %v312_v37, %v311_v36  ;;  %682 = vmatpush1.msra.mxu1 %v483_v30  ;;  %v480_v36 = vld [vmem:[#allocation5 + $0x68] sm:$0xff]  ;;  %612 = vmatprep.subr.mxu0 %v547_v31  ;;  %v544_v37 = vld [vmem:[#allocation5 + $0x260] sm:$0xff]  ;;  %v543_v39 = vld [vmem:[#allocation5 + $0x258] sm:$0xff] }
  0xf8   : > { %683 = vmatprep.subr.mxu1 %v482_v32  ;;  %v479_v38 = vld [vmem:[#allocation5 + $0x60] sm:$0xff]  ;;  %613 = vmatpush1.msra.mxu0 %v546_v33  ;;  %v530_v12 = vld [vmem:[#allocation5 + $0x1f8] sm:$0xff]  ;;  %v529_v14 = vld [vmem:[#allocation5 + $0x1f0] sm:$0xff] }
  0xf9   : > { %v353_v46 = vmul.f32 %v351_v42, %v273_v40  ;;  %v352_v47 = vmul.f32 %v351_v42, %v272_v41  ;;  %v1350_v48 = vmul.f32 %v313_v45, %v273_v40  ;;  %v1352_v49 = vmul.f32 %v313_v45, %v272_v41  ;;  %684 = vmatpush1.msra.mxu1 %v481_v34  ;;  %v478_v40 = vld [vmem:[#allocation5 + $0x58] sm:$0xff]  ;;  %v542_v41 = vld [vmem:[#allocation5 + $0x250] sm:$0xff]  ;;  %v528_v16 = vld [vmem:[#allocation5 + $0x1e8] sm:$0xff] }
  0xfa   : > { %v1354_v50 = vmul.f32 %v313_v45, %v274_v43  ;;  %v1356_v51 = vmul.f32 %v313_v45, %v275_v44  ;;  %v354_v52 = vmul.f32 %v351_v42, %v274_v43  ;;  %v355_v53 = vmul.f32 %v351_v42, %v275_v44  ;;  %614 = vmatprep.subr.mxu0 %v545_v35  ;;  %v477_v42 = vld [vmem:[#allocation5 + $0x50] sm:$0xff]  ;;  %v541_v43 = vld [vmem:[#allocation5 + $0x248] sm:$0xff]  ;;  %v540_v45 = vld [vmem:[#allocation5 + $0x240] sm:$0xff] }
  0xfb   : > { %362 = vrot.lane.b32.xlu1 %v353_v46, %s1112_s23  ;;  %360 = vrot.lane.b32.xlu0 %v352_v47, %s1112_s23  ;;  %v476_v44 = vld [vmem:[#allocation5 + $0x48] sm:$0xff]  ;;  %v475_v46 = vld [vmem:[#allocation5 + $0x40] sm:$0xff]  ;;  %v539_v47 = vld [vmem:[#allocation5 + $0x238] sm:$0xff] }
  0xfc   : > { %685 = vmatprep.subr.mxu1 %v480_v36  ;;  %615 = vmatpush1.msra.mxu0 %v544_v37  ;;  %v592_v17 = vld [vmem:[#allocation5 + $0x3e0] sm:$0xff]  ;;  %v591_v19 = vld [vmem:[#allocation5 + $0x3d8] sm:$0xff] }
  0xfd   : > { %686 = vmatpush1.msra.mxu1 %v479_v38  ;;  %616 = vmatprep.subr.mxu0 %v543_v39  ;;  %v527_v18 = vld [vmem:[#allocation5 + $0x1e0] sm:$0xff]  ;;  %v526_v20 = vld [vmem:[#allocation5 + $0x1d8] sm:$0xff]  ;;  %v525_v39 = vld [vmem:[#allocation5 + $0x1d0] sm:$0xff] }
  0xfe   : > { %687 = vmatprep.subr.mxu1 %v478_v40  ;;  %617 = vmatpush1.msra.mxu0 %v542_v41  ;;  %v589_v40 = vld [vmem:[#allocation5 + $0x3c8] sm:$0xff]  ;;  %v588_v41 = vld [vmem:[#allocation5 + $0x3c0] sm:$0xff] }
  0xff   : > { %364 = vrot.lane.b32.xlu1 %v354_v52, %s1112_s23  ;;  %688 = vmatpush1.msra.mxu1 %v477_v42  ;;  %v474_v52 = vld [vmem:[#allocation5 + $0x38] sm:$0xff]  ;;  %v523_v42 = vld [vmem:[#allocation5 + $0x1c0] sm:$0xff] }
 0x100   : > { %618 = vmatprep.subr.mxu0 %v541_v43  ;;  %689 = vmatprep.subr.mxu1 %v476_v44  ;;  %v587_v44 = vld [vmem:[#allocation5 + $0x3b8] sm:$0xff] }
 0x101   : > { %619 = vmatpush1.msra.mxu0 %v540_v45  ;;  %690 = vmatpush1.msra.mxu1 %v475_v46  ;;  %v522_v45 = vld [vmem:[#allocation5 + $0x1b8] sm:$0xff] }
 0x102   : > { %620 = vmatprep.subr.mxu0 %v539_v47  ;;  %691 = vmatprep.subr.mxu1 %v474_v52  ;;  %v586_v47 = vld [vmem:[#allocation5 + $0x3b0] sm:$0xff] }
 0x103   : > { %366 = vrot.lane.b32.xlu1 %v355_v53, %s1112_s23  ;;  %v538_v53 = vld [vmem:[#allocation5 + $0x230] sm:$0xff]  ;;  %692 = vmatpush1.msra.mxu1 %v473_v54  ;;  %v520_v54 = vld [vmem:[#allocation5 + $0x1a8] sm:$0xff] }
 0x104   : > { %621 = vmatpush1.msra.mxu0 %v538_v53  ;;  %693 = vmatprep.subr.mxu1 %v472_v56  ;;  %v521_v52 = vld [vmem:[#allocation5 + $0x1b0] sm:$0xff]  ;;  %v585_v53 = vld [vmem:[#allocation5 + $0x3a8] sm:$0xff]  ;;  %v519_v56 = vld [vmem:[#allocation5 + $0x1a0] sm:$0xff] }
 0x105   : > { %622 = vmatprep.subr.mxu0 %v537_v55  ;;  %694 = vmatpush1.msra.mxu1 %v471_v58  ;;  %v584_v55 = vld [vmem:[#allocation5 + $0x3a0] sm:$0xff] }
 0x106   : > { %623 = vmatpush1.msra.mxu0 %v536_v57  ;;  %695 = vmatprep.subr.mxu1 %v470_v60  ;;  %v583_v57 = vld [vmem:[#allocation5 + $0x398] sm:$0xff]  ;;  %v582_v60 = vld [vmem:[#allocation5 + $0x390] sm:$0xff] }
 0x107   : > { %624 = vmatprep.subr.mxu0 %v535_v59  ;;  %696 = vmatpush1.msra.mxu1 %v469_v62  ;;  %v518_v59 = vld [vmem:[#allocation5 + $0x198] sm:$0xff]  ;;  %v581_v62 = vld [vmem:[#allocation5 + $0x388] sm:$0xff] }
 0x108   : > { %625 = vmatpush1.msra.mxu0 %v534_v61  ;;  %697 = vmatprep.subr.mxu1 %v468_v3  ;;  %v517_v61 = vld [vmem:[#allocation5 + $0x190] sm:$0xff]  ;;  %v580_v3 = vld [vmem:[#allocation5 + $0x380] sm:$0xff] }
 0x109   : > { %626 = vmatprep.subr.mxu0 %v533_v63  ;;  %698 = vmatpush1.msra.mxu1 %v467_v8  ;;  %v516_v63 = vld [vmem:[#allocation5 + $0x188] sm:$0xff] }
 0x10a   : > { %627 = vmatpush1.msra.mxu0 %v532_v7  ;;  %699 = vmatprep.subr.mxu1 %v530_v12  ;;  %v515_v7 = vld [vmem:[#allocation5 + $0x180] sm:$0xff]  ;;  %v514_v12 = vld [vmem:[#allocation5 + $0x178] sm:$0xff] }
 0x10b   : > { %628 = vmatprep.subr.mxu0 %v595_v9  ;;  %700 = vmatpush2.msra.mxu1 %v529_v14  ;;  %v579_v9 = vld [vmem:[#allocation5 + $0x378] sm:$0xff]  ;;  %v513_v14 = vld [vmem:[#allocation5 + $0x170] sm:$0xff] }
 0x10c   : > { %629 = vmatpush2.msra.mxu0 %v594_v13  ;;  %701 = vmatprep.subr.mxu1 %v528_v16  ;;  %v578_v13 = vld [vmem:[#allocation5 + $0x370] sm:$0xff]  ;;  %v512_v16 = vld [vmem:[#allocation5 + $0x168] sm:$0xff] }
 0x10d   : > { %630 = vmatprep.subr.mxu0 %v593_v15  ;;  %702 = vmatpush2.msra.mxu1 %v527_v18  ;;  %v577_v15 = vld [vmem:[#allocation5 + $0x368] sm:$0xff]  ;;  %v511_v18 = vld [vmem:[#allocation5 + $0x160] sm:$0xff] }
 0x10e   : > { %631 = vmatpush2.msra.mxu0 %v592_v17  ;;  %703 = vmatprep.subr.mxu1 %v526_v20  ;;  %v576_v17 = vld [vmem:[#allocation5 + $0x360] sm:$0xff]  ;;  %v510_v20 = vld [vmem:[#allocation5 + $0x158] sm:$0xff] }
 0x10f   : > { %632 = vmatprep.subr.mxu0 %v591_v19  ;;  %704 = vmatpush2.msra.mxu1 %v525_v39  ;;  %v575_v19 = vld [vmem:[#allocation5 + $0x358] sm:$0xff]  ;;  %v499_v39 = vld [vmem:[#allocation5 + $0x100] sm:$0xff] }
 0x16d   : > { %v363_v21 = vpop.permute.xlu1 %362  ;;  %v361_v22 = vpop.permute.xlu0 %360 }
 0x16e   : > { %v373_v23 = vadd.f32 %v363_v21, %v1350_v48  ;;  %v372_v24 = vadd.f32 %v361_v22, %v1352_v49  ;;  %v574_v21 = vld [vmem:[#allocation5 + $0x350] sm:$0xff] }
 0x16f   : > { %v509_v22 = vld [vmem:[#allocation5 + $0x150] sm:$0xff] }
 0x170   : > { %v883_v25 = vmul.f32 -1.442695, %v373_v23  ;;  %v882_v26 = vmul.f32 -1.442695, %v372_v24  ;;  %v573_v23 = vld [vmem:[#allocation5 + $0x348] sm:$0xff] }
 0x171   : > { %v365_v27 = vpop.permute.xlu1 %364  ;;  %v508_v24 = vld [vmem:[#allocation5 + $0x148] sm:$0xff] }
 0x172   : > { %960 = vpow2.f32 %v883_v25  ;;  %v374_v28 = vadd.f32 %v365_v27, %v1354_v50  ;;  %v590_v50 = vld [vmem:[#allocation5 + $0x3d0] sm:$0xff]  ;;  %v572_v25 = vld [vmem:[#allocation5 + $0x340] sm:$0xff]  ;;  %v571_v27 = vld [vmem:[#allocation5 + $0x338] sm:$0xff] }
 0x173   : > { %962 = vpow2.f32 %v882_v26  ;;  %633 = vmatpush2.msra.mxu0 %v590_v50  ;;  %v507_v26 = vld [vmem:[#allocation5 + $0x140] sm:$0xff] }
 0x174   : > { %v884_v29 = vmul.f32 -1.442695, %v374_v28  ;;  %634 = vmatprep.subr.mxu0 %v589_v40  ;;  %v506_v28 = vld [vmem:[#allocation5 + $0x138] sm:$0xff]  ;;  %v564_v50 = vld [vmem:[#allocation5 + $0x300] sm:$0xff] }
 0x175   : > { %v367_v30 = vpop.permute.xlu1 %366  ;;  %635 = vmatpush2.msra.mxu0 %v588_v41 }
 0x176   : > { %964 = vpow2.f32 %v884_v29  ;;  %v375_v31 = vadd.f32 %v367_v30, %v1356_v51  ;;  %v524_v51 = vld [vmem:[#allocation5 + $0x1c8] sm:$0xff]  ;;  %636 = vmatprep.subr.mxu0 %v587_v44  ;;  %v570_v29 = vld [vmem:[#allocation5 + $0x330] sm:$0xff] }
 0x177   : > { %705 = vmatprep.subr.mxu1 %v524_v51  ;;  %637 = vmatpush2.msra.mxu0 %v586_v47  ;;  %v505_v30 = vld [vmem:[#allocation5 + $0x130] sm:$0xff] }
 0x178   : > { %v885_v32 = vmul.f32 -1.442695, %v375_v31  ;;  %706 = vmatpush2.msra.mxu1 %v523_v42  ;;  %638 = vmatprep.subr.mxu0 %v585_v53  ;;  %v569_v31 = vld [vmem:[#allocation5 + $0x328] sm:$0xff] }
 0x179   : > { %707 = vmatprep.subr.mxu1 %v522_v45  ;;  %639 = vmatpush2.msra.mxu0 %v584_v55 }
 0x17a   : > { %966 = vpow2.f32 %v885_v32  ;;  %708 = vmatpush2.msra.mxu1 %v521_v52  ;;  %640 = vmatprep.subr.mxu0 %v583_v57  ;;  %v504_v32 = vld [vmem:[#allocation5 + $0x128] sm:$0xff] }
 0x17b   : > { %709 = vmatprep.subr.mxu1 %v520_v54  ;;  %641 = vmatpush2.msra.mxu0 %v582_v60 }
 0x17c   : > { %710 = vmatpush2.msra.mxu1 %v519_v56  ;;  %642 = vmatprep.subr.mxu0 %v581_v62 }
 0x17d   : > { %711 = vmatprep.subr.mxu1 %v518_v59  ;;  %643 = vmatpush2.msra.mxu0 %v580_v3 }
 0x17e   : > { %712 = vmatpush2.msra.mxu1 %v517_v61  ;;  %644 = vmatprep.subr.mxu0 %v579_v9 }
 0x17f   : > { %v961_v33 = vpop.eup %960  ;;  %713 = vmatprep.subr.mxu1 %v516_v63  ;;  %645 = vmatpush2.msra.mxu0 %v578_v13 }
 0x180   : > { %v963_v34 = vpop.eup %962  ;;  %v389_v35 = vadd.f32 1.0, %v961_v33  ;;  %714 = vmatpush2.msra.mxu1 %v515_v7  ;;  %646 = vmatprep.subr.mxu0 %v577_v15  ;;  %v568_v33 = vld [vmem:[#allocation5 + $0x320] sm:$0xff] }
 0x181   : > { %v388_v48 = vadd.f32 1.0, %v963_v34  ;;  %715 = vmatprep.subr.mxu1 %v514_v12  ;;  %647 = vmatpush2.msra.mxu0 %v576_v17  ;;  %v503_v34 = vld [vmem:[#allocation5 + $0x120] sm:$0xff] }
 0x182   : > { %968 = vrcp.f32 %v389_v35  ;;  %716 = vmatpush2.msra.mxu1 %v513_v14  ;;  %648 = vmatprep.subr.mxu0 %v575_v19  ;;  %v567_v35 = vld [vmem:[#allocation5 + $0x318] sm:$0xff] }
 0x183   : > { %v965_v49 = vpop.eup %964  ;;  %970 = vrcp.f32 %v388_v48  ;;  %717 = vmatprep.subr.mxu1 %v512_v16  ;;  %649 = vmatpush2.msra.mxu0 %v574_v21  ;;  %v502_v48 = vld [vmem:[#allocation5 + $0x118] sm:$0xff] }
 0x184   : > { %v390_v36 = vadd.f32 1.0, %v965_v49  ;;  %718 = vmatpush2.msra.mxu1 %v511_v18  ;;  %650 = vmatprep.subr.mxu0 %v573_v23  ;;  %v566_v49 = vld [vmem:[#allocation5 + $0x310] sm:$0xff] }
 0x185   : > { %719 = vmatprep.subr.mxu1 %v510_v20  ;;  %651 = vmatpush2.msra.mxu0 %v572_v25 }
 0x186   : > { %972 = vrcp.f32 %v390_v36  ;;  %720 = vmatpush2.msra.mxu1 %v509_v22  ;;  %652 = vmatprep.subr.mxu0 %v571_v27  ;;  %v501_v36 = vld [vmem:[#allocation5 + $0x110] sm:$0xff] }
 0x187   : > { %v967_v37 = vpop.eup %966  ;;  %721 = vmatprep.subr.mxu1 %v508_v24  ;;  %653 = vmatpush2.msra.mxu0 %v570_v29 }
 0x188   : > { %v391_v38 = vadd.f32 1.0, %v967_v37  ;;  %722 = vmatpush2.msra.mxu1 %v507_v26  ;;  %654 = vmatprep.subr.mxu0 %v569_v31  ;;  %v565_v37 = vld [vmem:[#allocation5 + $0x308] sm:$0xff] }
 0x189   : > { %723 = vmatprep.subr.mxu1 %v506_v28  ;;  %655 = vmatpush2.msra.mxu0 %v568_v33 }
 0x18a   : > { %974 = vrcp.f32 %v391_v38  ;;  %724 = vmatpush2.msra.mxu1 %v505_v30  ;;  %v500_v38 = vld [vmem:[#allocation5 + $0x108] sm:$0xff]  ;;  %656 = vmatprep.subr.mxu0 %v567_v35 }
 0x18b   : > { %725 = vmatprep.subr.mxu1 %v504_v32  ;;  %657 = vmatpush2.msra.mxu0 %v566_v49 }
 0x18c   : > { %726 = vmatpush2.msra.mxu1 %v503_v34  ;;  %658 = vmatprep.subr.mxu0 %v565_v37 }
 0x18d   : > { %727 = vmatprep.subr.mxu1 %v502_v48  ;;  %659 = vmatpush2.msra.mxu0 %v564_v50  ;;  %v750_v50 = vlaneseq }
 0x18e   : > { %728 = vmatpush2.msra.mxu1 %v501_v36 }
 0x18f   : > { %v969_v43 = vpop.eup %968  ;;  %729 = vmatprep.subr.mxu1 %v500_v38 }
 0x190   : > { %v971_v46 = vpop.eup %970  ;;  %407 = vperm.xlu1 %959, %v969_v43   ;;  %730 = vmatpush2.msra.mxu1 %v499_v39  ;;  %v751_v39 = vshrl.u32 %v750_v50, 7 }
 0x191   : > { %402 = vperm.xlu0 %958, %v971_v46  }
 0x193   : > { %v973_v58 = vpop.eup %972 }
 0x194   : > { %412 = vperm.xlu1 %959, %v973_v58  }
 0x197   : > { %v975_v8 = vpop.eup %974 }
 0x198   : > { %417 = vperm.xlu0 %958, %v975_v8  }
 0x20b   : > { %v408_v40 = vpop.permute.xlu1 %407 }
 0x20c   : > { %v403_v51 = vpop.permute.xlu0 %402  ;;  %v1363_v41 = vmul.f32 %v408_v40, %v1288_v5  ;;  %v1366_v42 = vmul.f32 %v408_v40, %v1290_v6  ;;  %v752_v40 = vsub.s32 0, %v751_v39 }
 0x20d   : > { %v1369_v43 = vmul.f32 %v403_v51, %v1282_v2  ;;  %v1372_v44 = vmul.f32 %v403_v51, %v1286_v4 }
 0x20f   : > { %v413_v45 = vpop.permute.xlu1 %412  ;;  %v428_v5 = vadd.f32 %v1363_v41, %v1369_v43  ;;  %v437_v6 = vadd.f32 %v1366_v42, %v1372_v44 }
 0x210   : > { %v1375_v46 = vmul.f32 %v413_v45, %v1278_v0  ;;  %v1378_v47 = vmul.f32 %v413_v45, %v1280_v1 }
 0x212   : > { %v429_v2 = vadd.f32 %v428_v5, %v1375_v46  ;;  %v438_v53 = vadd.f32 %v437_v6, %v1378_v47  ;;  %v449_v1 = vmax.f32 %v1369_v43, %v1375_v46  ;;  %v458_v54 = vmax.f32 %v1372_v44, %v1378_v47 }
 0x213   : > { %v418_v52 = vpop.permute.xlu0 %417 }
 0x214   : > { %v1387_v4 = vmul.f32 %v418_v52, %v1298_v10  ;;  %v1390_v0 = vmul.f32 %v418_v52, %v1300_v11 }
 0x216   : > { %v430_v55 = vadd.f32 %v429_v2, %v1387_v4  ;;  %v439_v56 = vadd.f32 %v438_v53, %v1390_v0  ;;  %v450_v57 = vmax.f32 %v1363_v41, %v1387_v4  ;;  %v459_v10 = vmax.f32 %v1366_v42, %v1390_v0 }
 0x218   : > { %v431_v58 = vrot.slane %v430_v55, 4  ;;  %v451_v59 = vmax.f32 %v449_v1, %v450_v57  ;;  %v460_v11 = vmax.f32 %v458_v54, %v459_v10  ;;  %v440_v60 = vrot.slane %v439_v56, 4 }
 0x21a   : > { %v432_v61 = vadd.f32 %v431_v58, %v430_v55  ;;  %v452_v62 = vrot.slane %v451_v59, 4  ;;  %v461_v63 = vrot.slane %v460_v11, 4  ;;  %v441_v3 = vadd.f32 %v440_v60, %v439_v56 }
 0x21c   : > { %v462_v7 = vmax.f32 %v460_v11, %v461_v63  ;;  %v442_v8 = vrot.slane %v441_v3, 2  ;;  %v453_v9 = vmax.f32 %v451_v59, %v452_v62  ;;  %v433_v12 = vrot.slane %v432_v61, 2 }
 0x21e   : > { %v463_v13 = vrot.slane %v462_v7, 2  ;;  %v443_v14 = vadd.f32 %v442_v8, %v441_v3  ;;  %v454_v15 = vrot.slane %v453_v9, 2  ;;  %v434_v16 = vadd.f32 %v433_v12, %v432_v61 }
 0x220   : > { %v464_v17 = vmax.f32 %v462_v7, %v463_v13  ;;  %v444_v18 = vrot.slane %v443_v14, 1  ;;  %v455_v19 = vmax.f32 %v453_v9, %v454_v15  ;;  %v435_v20 = vrot.slane %v434_v16, 1 }
 0x222   : > { %v465_v21 = vrot.slane %v464_v17, 1  ;;  %v445_v22 = vadd.f32 %v444_v18, %v443_v14  ;;  %v456_v23 = vrot.slane %v455_v19, 1  ;;  %v436_v24 = vadd.f32 %v435_v20, %v434_v16 }
 0x224   : > { %v466_v25 = vmax.f32 %v464_v17, %v465_v21  ;;  %v448_v26 = vmul.f32 0.03125, %v445_v22  ;;  %v457_v27 = vmax.f32 %v455_v19, %v456_v23  ;;  %v447_v28 = vmul.f32 0.03125, %v436_v24 }
 0x226   : > { %660 = vmatprep.mubr.f32.mxu0 %v466_v25  ;;  %731 = vmatprep.mubr.f32.mxu1 %v448_v26 }
 0x227   : > { %661 = vmatmul.mubr.f32.vlgmr.msra.gmra.mxu0 %v457_v27  ;;  %732 = vmatmul.mubr.f32.vlgmr.msra.gmra.mxu1 %v447_v28 }
 0x2e7   : > { %v662_v29 = vpop.f32.mrf.mxu0  ;;  %v733_v30 = vpop.f32.mrf.mxu1 }
 0x2e8   : > { %v734_v31 = vadd.f32 %v733_v30, %v662_v29 }
 0x2e9   : > { %v664_v32 = vpop.f32.mrf.mxu0  ;;  %v735_v33 = vpop.f32.mrf.mxu1 }
 0x2ea   : > { %v886_v34 = vmul.f32 -1.442695, %v734_v31  ;;  %v736_v35 = vadd.f32 %v735_v33, %v664_v32 }
 0x2ec   : > { %976 = vpow2.f32 %v886_v34  ;;  %v887_v48 = vmul.f32 -1.442695, %v736_v35 }
 0x2ee   : > { %978 = vpow2.f32 %v887_v48 }
 0x2f9   : > { %v977_v49 = vpop.eup %976 }
 0x2fa   : > { %v744_v36 = vadd.f32 1.0, %v977_v49 }
 0x2fb   : > { %v979_v37 = vpop.eup %978 }
 0x2fc   : > { %980 = vrcp.f32 %v744_v36  ;;  %v745_v38 = vadd.f32 1.0, %v979_v37 }
 0x2fe   : > { %982 = vrcp.f32 %v745_v38 }
 0x309   : > { %v981_v51 = vpop.eup %980 }
 0x30a   : > { %v753_v45 = vrot.slane %v981_v51, %v752_v40 }
 0x30b   : > { %v983_v5 = vpop.eup %982 }
 0x30c   : > { %v758_v6 = vmul.f32 %v753_v45, %v1369_v43  ;;  %v760_v52 = vmul.f32 %v753_v45, %v1363_v41  ;;  %v762_v2 = vmul.f32 %v753_v45, %v1375_v46  ;;  %v764_v53 = vmul.f32 %v753_v45, %v1387_v4 }
 0x30d   : > { %v757_v1 = vrot.slane %v983_v5, %v752_v40 }
 0x30e   : > { %766 = vst [vmem:[%s230_s6] sm:$0xff] %v758_v6  ;;  %768 = vst [vmem:[%s230_s6 + $0x10] sm:$0xff] %v760_v52 }
 0x30f   : > { %770 = vst [vmem:[%s230_s6 + $0x20] sm:$0xff] %v762_v2  ;;  %772 = vst [vmem:[%s230_s6 + $0x30] sm:$0xff] %v764_v53  ;;  %v759_v41 = vmul.f32 %v757_v1, %v1372_v44  ;;  %v761_v43 = vmul.f32 %v757_v1, %v1366_v42  ;;  %v763_v46 = vmul.f32 %v757_v1, %v1378_v47 }
 0x310   : > { %v765_v4 = vmul.f32 %v757_v1, %v1390_v0 }
 0x311   : > { %767 = vst [vmem:[%s230_s6 + $0x8] sm:$0xff] %v759_v41  ;;  %769 = vst [vmem:[%s230_s6 + $0x18] sm:$0xff] %v761_v43 }
 0x312   : > { %771 = vst [vmem:[%s230_s6 + $0x28] sm:$0xff] %v763_v46  ;;  %773 = vst [vmem:[%s230_s6 + $0x38] sm:$0xff] %v765_v4 }
 0x313   : > { %1051 = shalt.err (!%p1048_p0)
}
 0x314   : > { %s1052_s25 = scalar_lea.hbm %s1412_s8, 1024  ;;  %s1056_s28 = scalar_lea.hbm %s1465_s4, 2048 }
 0x315   : > { %p1053_p5 = scmp.ne.s32.totalorder %s1412_s8, %s1052_s25  ;;  %p1057_p4 = scmp.lt.s32.totalorder %s1412_s8, %s1465_s4 }
 0x316   : > { %p1058_p6 = scmp.lt.s32.totalorder %s1056_s28, %s1052_s25 }
 0x317   : > { %p1054_p2 = pnand %p1053_p5, %p1481_p11 }
 0x318   : > { %p1059_p8 = por %p1058_p6, %p1057_p4 }
 0x319   : > { %p1055_p1 = pneg %p1054_p2 }
 0x31b   : > { %p1060_p3 = pnand %p1059_p8, %p1055_p1 }
 0x31d   : > { %1063 = shalt.err (!%p1060_p3)
}
 0x31e   : > { %s1115_s5 = smov 256   ;;  %s1116_s6 = smov 16  }
 0x31f   : > { %901 = dma.vmem_to_hbm [thread:$0]  (%p1481_p11), %s1414_s24, 1024, %s1412_s8, %s775_s29, %s1115_s5, %s1115_s5, %s1116_s6  }
 0x320 PF: > { %s803_s26 = sand.u32 1, %s1094_s15   ;;  %p1482_p7 = scmp.ne.s32.totalorder %s1471_s22, 0 }
 0x321   : > { %p1483_p9 = scmp.ge.s32.totalorder %s1106_s18, 2  ;;  %s804_s19 = scalar_lea.sflag [#allocation4], %s803_s26 }
 0x323   : > { %p912_p10 = pnand %p1483_p9, %p1482_p7 }
 0x325   : > { %p913_p12 = pneg %p912_p10 }
 0x327   : > { %1089 = dma.done.wait (%p913_p12), %s804_s19, 1024  }
 0x328   : > { %1091 = vsyncadd (%p913_p12), %s804_s19, 4294966272  ;;  %p18_p13 = scmp.ge.s32.totalorder %s1196_s27, 4   ;;  %s1484_s15 = smov %s1098_s16 }
 0x329   : > { %s1485_s16 = smov %s1102_s17  ;;  %s1486_s17 = smov %s1216_s9 }
 0x32a   : > { %s1487_s18 = smov %s1196_s27  ;;  %20 = sbr.rel (!%p18_p13) target bundleno = 6 (0x6), region = 86 }
 0x32f   :  { %809 = vsyncpa [#allocation3], 1 }
 0x330   :  { %811 = vsyncpa [#allocation3 + $0x1], 1 }
 0x331   :  { %812 = vsyncpa [#allocation6], 1 }
 0x332   :  { %813 = vsyncpa [#allocation4], 1 }
 0x333   :  { %815 = vsyncpa [#allocation4 + $0x1], 1 }

</bundles_post_ra>
